<compile_context>
chip_gen: v7x
topology: tpu7x:2x2x1
jax: 0.10.0
libtpu: 0.0.40
codegen_flags: <defaults>
</compile_context>

<pallas_src>
import jax
import jax.numpy as jnp
from jax.experimental import pallas as pl
from jax.experimental.pallas import tpu as pltpu


def _biasfree_ln_kernel(x_ref, w_ref, o_ref):
    # x_ref: (TR, H) tile, w_ref: (1, H), o_ref: (TR, H)
    H = x_ref.shape[-1]
    x_nat = x_ref[...]                      # native dtype (f32 or bf16)
    w_nat = w_ref[...]                      # (1, H) broadcasts over rows

    # Single fused reduction pass in f32: sum(x) and sum(x*x) together,
    # then var = E[x^2] - mean^2 (clamped at 0 for numerical safety).
    xf = x_nat.astype(jnp.float32)
    s1 = jnp.sum(xf, axis=-1, keepdims=True)
    s2 = jnp.sum(xf * xf, axis=-1, keepdims=True)
    inv_h = jnp.float32(1.0 / H)
    mean = s1 * inv_h
    var = jnp.maximum(s2 * inv_h - mean * mean, 0.0)
    inv = jax.lax.rsqrt(var + 1e-5)

    # Epilogue in the native dtype: for bf16 inputs (v6e/v7x) this halves the
    # live vreg/VMEM footprint; for f32 it is identical to an f32 epilogue.
    o_ref[...] = (x_nat * inv.astype(x_nat.dtype)
                  * w_nat.astype(x_nat.dtype)).astype(o_ref.dtype)


def _round_up(x, m):
    return ((x + m - 1) // m) * m


def _pick_row_tile(rows, H, itemsize, vmem_budget_bytes):
    """Choose a row-tile that (a) fills the VMEM pipeline budget, (b) respects
    dtype sublane packing, (c) never exceeds what the input actually needs."""
    if itemsize >= 4:
        sub = 8
    elif itemsize == 2:
        sub = 16
    else:
        sub = 32
    # Pipeline buffers: (in + out) x double-buffer = 4 tiles resident.
    per_row_bytes = 4 * H * itemsize
    tr = max(sub, vmem_budget_bytes // max(per_row_bytes, 1))
    tr = min(tr, 1024)                       # diminishing returns past ~1K rows
    tr = min(tr, _round_up(rows, sub))       # don't exceed (padded) input size
    tr = max(sub, (tr // sub) * sub)         # multiple of sublane pack
    return tr


def biasfree_layernorm(x, weight, *, vmem_budget_bytes=16 * 1024 * 1024):
    """x: (..., H); weight: (H,). Returns same shape/dtype as x.

    Note: H being a multiple of 128 (lane width) is the fast path; smaller H is
    legal (block equals the full dim) but under-fills lanes.
    """
    H = x.shape[-1]
    assert weight.shape == (H,)
    lead = x.shape[:-1]
    rows = 1
    for d in lead:
        rows *= d
    x2 = x.reshape(rows, H)
    w2 = weight.reshape(1, H)

    itemsize = jnp.dtype(x.dtype).itemsize
    tr = _pick_row_tile(rows, H, itemsize, vmem_budget_bytes)

    # Pad the row axis to a multiple of the tile instead of asserting; padded
    # (all-zero) rows produce finite garbage that is sliced away below.
    padded_rows = _round_up(rows, tr)
    if padded_rows != rows:
        x2 = jnp.pad(x2, ((0, padded_rows - rows), (0, 0)))

    grid = (padded_rows // tr,)

    out = pl.pallas_call(
        _biasfree_ln_kernel,
        out_shape=jax.ShapeDtypeStruct((padded_rows, H), x.dtype),
        grid_spec=pltpu.PrefetchScalarGridSpec(
            num_scalar_prefetch=0,
            grid=grid,
            in_specs=[
                pl.BlockSpec((tr, H), lambda i: (i, 0)),   # x tile
                pl.BlockSpec((1, H), lambda i: (0, 0)),    # weight (constant block)
            ],
            out_specs=pl.BlockSpec((tr, H), lambda i: (i, 0)),
        ),
        compiler_params=pltpu.CompilerParams(
            # Parallel row axis: lets the 2 TensorCores on v7x split the loop.
            dimension_semantics=("parallel",),
            # Raise the scoped VMEM limit above the 16/32 MiB defaults so the
            # large row tiles compile on every generation; 48 MiB stays well
            # under v7x's 64 MiB physical VMEM.
            vmem_limit_bytes=48 * 1024 * 1024,
        ),
    )(x2, w2)

    if padded_rows != rows:
        out = out[:rows]
    return out.reshape(*lead, H)


def _reference(x, weight):
    xf = x.astype(jnp.float32)
    var = jnp.var(xf, axis=-1, keepdims=True)   # ddof=0 == unbiased=False
    return (xf / jnp.sqrt(var + 1e-5) * weight.astype(jnp.float32)).astype(x.dtype)


if __name__ == "__main__":
    key = jax.random.PRNGKey(0)

    # Case 1: module-implied small shape (normalized_shape = 32), f32.
    B, S, H = 2, 8, 32
    x1 = jax.random.normal(key, (B, S, H), dtype=jnp.float32)
    w1 = jnp.ones((H,), dtype=jnp.float32)      # nn.Parameter(torch.ones(H))
    out1 = jax.block_until_ready(biasfree_layernorm(x1, w1))
    ref1 = _reference(x1, w1)
    assert out1.shape == x1.shape and out1.dtype == x1.dtype
    assert jnp.allclose(out1, ref1, atol=1e-4, rtol=1e-4)

    # Case 2: row count not a multiple of the tile (exercises padding), f32.
    k2 = jax.random.fold_in(key, 1)
    x2 = jax.random.normal(k2, (3, 7, 128), dtype=jnp.float32)
    w2 = jax.random.normal(jax.random.fold_in(key, 2), (128,), dtype=jnp.float32)
    out2 = jax.block_until_ready(biasfree_layernorm(x2, w2))
    ref2 = _reference(x2, w2)
    assert out2.shape == x2.shape and out2.dtype == x2.dtype
    assert jnp.allclose(out2, ref2, atol=1e-4, rtol=1e-4)

    # Case 3: bf16 input (bf16 epilogue path), lane-dense H.
    k3 = jax.random.fold_in(key, 3)
    x3 = jax.random.normal(k3, (2, 16, 256), dtype=jnp.float32).astype(jnp.bfloat16)
    w3 = jnp.ones((256,), dtype=jnp.bfloat16)
    out3 = jax.block_until_ready(biasfree_layernorm(x3, w3))
    ref3 = _reference(x3, w3)
    assert out3.shape == x3.shape and out3.dtype == x3.dtype
    assert jnp.allclose(out3.astype(jnp.float32), ref3.astype(jnp.float32),
                        atol=5e-2, rtol=5e-2)

    print("KERNEL_OK")
</pallas_src>

<mosaic_0001>
module attributes {stable_mosaic.version = 11 : i64} {
  func.func @_biasfree_ln_kernel(%arg0: i32, %arg1: memref<16x32xf32, #tpu.memory_space<vmem>>, %arg2: memref<1x32xf32, #tpu.memory_space<vmem>>, %arg3: memref<16x32xf32, #tpu.memory_space<vmem>>) attributes {dimension_semantics = [#tpu.dimension_semantics<parallel>], iteration_bounds = array<i64: 1>, scalar_prefetch = 0 : i64, scratch_operands = 0 : i64, tpu.core_type = #tpu.core_type<tc>, window_params = [{transform_indices = @transform_0, window_bounds = array<i64: 16, 32>}, {pipeline_mode = #tpu.pipeline_mode<synchronous>, transform_indices = @transform_1, window_bounds = array<i64: 1, 32>}, {transform_indices = @transform_2, window_bounds = array<i64: 16, 32>}]} {
    %c0 = arith.constant 0 : index
    %c0_0 = arith.constant 0 : index
    %0 = vector.load %arg1[%c0, %c0_0] : memref<16x32xf32, #tpu.memory_space<vmem>>, vector<16x32xf32>
    %c0_1 = arith.constant 0 : index
    %c0_2 = arith.constant 0 : index
    %1 = vector.load %arg2[%c0_1, %c0_2] : memref<1x32xf32, #tpu.memory_space<vmem>>, vector<1x32xf32>
    %cst = arith.constant dense<0.000000e+00> : vector<16xf32>
    %2 = vector.multi_reduction <add>, %0, %cst [1] : vector<16x32xf32> to vector<16xf32>
    %3 = vector.shape_cast %2 : vector<16xf32> to vector<16x1xf32>
    %4 = arith.mulf %0, %0 : vector<16x32xf32>
    %cst_3 = arith.constant dense<0.000000e+00> : vector<16xf32>
    %5 = vector.multi_reduction <add>, %4, %cst_3 [1] : vector<16x32xf32> to vector<16xf32>
    %6 = vector.shape_cast %5 : vector<16xf32> to vector<16x1xf32>
    %cst_4 = arith.constant 3.125000e-02 : f32
    %7 = vector.broadcast %cst_4 : f32 to vector<16x1xf32>
    %8 = arith.mulf %3, %7 : vector<16x1xf32>
    %cst_5 = arith.constant 3.125000e-02 : f32
    %9 = vector.broadcast %cst_5 : f32 to vector<16x1xf32>
    %10 = arith.mulf %6, %9 : vector<16x1xf32>
    %11 = arith.mulf %8, %8 : vector<16x1xf32>
    %12 = arith.subf %10, %11 : vector<16x1xf32>
    %cst_6 = arith.constant 0.000000e+00 : f32
    %13 = vector.broadcast %cst_6 : f32 to vector<16x1xf32>
    %14 = arith.maximumf %12, %13 : vector<16x1xf32>
    %cst_7 = arith.constant 9.99999974E-6 : f32
    %15 = vector.broadcast %cst_7 : f32 to vector<16x1xf32>
    %16 = arith.addf %14, %15 : vector<16x1xf32>
    %17 = math.rsqrt %16 : vector<16x1xf32>
    %18 = vector.broadcast %17 : vector<16x1xf32> to vector<16x32xf32>
    %19 = arith.mulf %0, %18 : vector<16x32xf32>
    %20 = vector.broadcast %1 : vector<1x32xf32> to vector<16x32xf32>
    %21 = arith.mulf %19, %20 : vector<16x32xf32>
    %c0_8 = arith.constant 0 : index
    %c0_9 = arith.constant 0 : index
    %22 = vector.load %arg3[%c0_8, %c0_9] : memref<16x32xf32, #tpu.memory_space<vmem>>, vector<16x32xf32>
    tpu.vector_store %arg3[%c0_8, %c0_9], %21 {strides = array<i32>} : memref<16x32xf32, #tpu.memory_space<vmem>>, vector<16x32xf32>,
    return
  }
  func.func @transform_0(%arg0: i32) -> (i32, i32) {
    %c0_i32 = arith.constant 0 : i32
    %c0_i32_0 = arith.constant 0 : i32
    return %arg0, %c0_i32 : i32, i32
  }
  func.func @transform_1(%arg0: i32) -> (i32, i32) {
    %c0_i32 = arith.constant 0 : i32
    %c0_i32_0 = arith.constant 0 : i32
    %c0_i32_1 = arith.constant 0 : i32
    return %c0_i32, %c0_i32_0 : i32, i32
  }
  func.func @transform_2(%arg0: i32) -> (i32, i32) {
    %c0_i32 = arith.constant 0 : i32
    %c0_i32_0 = arith.constant 0 : i32
    return %arg0, %c0_i32 : i32, i32
  }
}

</mosaic_0001>

<bundles_post_ra>
// kernel: tpu_custom_call.1
= control target key start
LH: loop header
LB: loop body
LE: loop exit
PB: predicated region body
PF: predicated region fallthrough
CT: control target
= control target key end

     0   :  { %7 = vsyncpa [#allocation3], 0  ;;  %s202_s0 = inlined_call_operand.hbm [shape: f32[16,32], index: 0, kind: input, shape index: {}]   ;;  %s203_s1 = inlined_call_operand.vmem [shape: f32[1,32], index: 1, kind: input, shape index: {}]   ;;  %s204_s2 = inlined_call_operand.hbm [shape: f32[16,32], index: 2, kind: output, shape index: {}]  }
   0x1   :  { %8 = vsyncpa [#allocation4], 0  ;;  %s144_s9 = smov [#allocation2]   ;;  %s96_s13 = scalar_lea.hbm %s202_s0, 256 }
   0x2   :  { %s14_s10 = sshll.u32 %s144_s9, 4  ;;  %p97_p0 = scmp.ne.s32.totalorder %s202_s0, %s96_s13  ;;  %s15_s10 = int_to_ptr.vmem [resolvable:$true] %s14_s10 }
   0x3   :  { %p100_p1 = scmp.lt.u32.totalorder %s96_s13, %s202_s0 }
   0x5   :  { %p102_p2 = pnand %p100_p1, %p97_p0 }
   0x7   :  { %105 = shalt.err (!%p102_p2)
}
   0x8   :  { %s106_s18 = scalar_lea.vmem %s15_s10, 256  ;;  %p111_p4 = scmp.lt.s32.totalorder %s15_s10, %s15_s10 }
   0x9   :  { %p107_p3 = scmp.ne.s32.totalorder %s15_s10, %s106_s18  ;;  %p112_p5 = scmp.lt.s32.totalorder %s106_s18, %s106_s18 }
   0xb   :  { %p113_p6 = por %p112_p5, %p111_p4 }
   0xd   :  { %p114_p7 = pnand %p113_p6, %p107_p3 }
   0xf   :  { %117 = shalt.err (!%p114_p7)
}
  0x10   :  { %s145_s19 = smov 128   ;;  %s146_s20 = smov 8  }
  0x11   :  { %20 = dma.hbm_to_vmem [thread:$0]  %s202_s0, 256, %s15_s10, [#allocation3], %s145_s19, %s145_s19, %s146_s20  }
  0x12   :  { %140 = dma.done.wait [#allocation3], 256  }
  0x13   :  { %141 = vsyncadd [#allocation3], 4294967040  ;;  %vm29_vm0 = vcmask 261120   ;;  %v26_v0 = vld [vmem:[#allocation2] sm:$0xff]  ;;  %v27_v1 = vld [vmem:[#allocation2 + $0x8] sm:$0xff]  ;;  %s147_s24 = smov [#allocation5]  }
  0x14   :  { %v30_v2 = vsel %vm29_vm0, %v26_v0, 0.0  ;;  %v36_v3 = vmul.f32 %v26_v0, %v26_v0  ;;  %v37_v4 = vmul.f32 %v27_v1, %v27_v1  ;;  %v33_v6 = vsel %vm29_vm0, %v27_v1, 0.0  ;;  %v87_v25 = vld [vmem:[%s203_s1] ss:$0 sm:$0xff]  ;;  %s75_s25 = sshll.u32 %s147_s24, 4  ;;  %s76_s25 = int_to_ptr.vmem [resolvable:$true] %s75_s25 }
  0x15   :  { %31 = vadd.xlane.f32.xlu0 %v30_v2  ;;  %s118_s26 = scalar_lea.vmem %s76_s25, 256  ;;  %p123_p9 = scmp.lt.s32.totalorder %s76_s25, %s76_s25 }
  0x16   :  { %v38_v5 = vsel %vm29_vm0, %v36_v3, 0.0  ;;  %v41_v7 = vsel %vm29_vm0, %v37_v4, 0.0  ;;  %p119_p8 = scmp.ne.s32.totalorder %s76_s25, %s118_s26  ;;  %p124_p10 = scmp.lt.s32.totalorder %s118_s26, %s118_s26 }
  0x17   :  { %39 = vadd.xlane.f32.xlu1 %v38_v5 }
  0x18   :  { %p125_p11 = por %p124_p10, %p123_p9 }
  0x19   :  { %34 = vadd.xlane.f32.xlu0 %v33_v6 }
  0x1a   :  { %p126_p12 = pnand %p125_p11, %p119_p8 }
  0x1b   :  { %42 = vadd.xlane.f32.xlu1 %v41_v7 }
  0xa2   :  { %v32_v8 = vpop.xlane.xlu0 %31 }
  0xa3   :  { %v44_v9 = vmul.f32 0.03125, %v32_v8 }
  0xa4   :  { %v40_v10 = vpop.xlane.xlu1 %39 }
  0xa5   :  { %v48_v11 = vmul.f32 %v44_v9, %v44_v9  ;;  %v46_v12 = vmul.f32 0.03125, %v40_v10 }
  0xa6   :  { %v35_v13 = vpop.xlane.xlu0 %34 }
  0xa7   :  { %v50_v14 = vsub.f32 %v46_v12, %v48_v11  ;;  %v45_v15 = vmul.f32 0.03125, %v35_v13 }
  0xa8   :  { %v43_v16 = vpop.xlane.xlu1 %42 }
  0xa9   :  { %v52_v17 = vmax.f32 %v50_v14, 0.0  ;;  %v49_v18 = vmul.f32 %v45_v15, %v45_v15  ;;  %v47_v19 = vmul.f32 0.03125, %v43_v16 }
  0xab   :  { %v54_v20 = vadd.f32 1e-05, %v52_v17  ;;  %v51_v21 = vsub.f32 %v47_v19, %v49_v18 }
  0xad   :  { %92 = vrsqrt.f32 %v54_v20  ;;  %v53_v22 = vmax.f32 %v51_v21, 0.0 }
  0xaf   :  { %v55_v23 = vadd.f32 1e-05, %v53_v22 }
  0xb1   :  { %94 = vrsqrt.f32 %v55_v23 }
  0xb7   :  { %v93_v24 = vpop.eup %92 }
  0xb8   :  { %v58_v26 = vmul.f32 %v93_v24, %v26_v0 }
  0xba   :  { %v66_v27 = vmul.f32 %v87_v25, %v58_v26 }
  0xbb   :  { %v95_v28 = vpop.eup %94 }
  0xbc   :  { %v59_v29 = vmul.f32 %v95_v28, %v27_v1  ;;  %68 = vst.msk [vmem:[#allocation5] sm:$0xff] %vm29_vm0, %v66_v27 }
  0xbe   :  { %v67_v30 = vmul.f32 %v87_v25, %v59_v29 }
  0xc0   :  { %69 = vst.msk [vmem:[#allocation5 + $0x8] sm:$0xff] %vm29_vm0, %v67_v30 }
  0xc1   :  { %129 = shalt.err (!%p126_p12)
}
  0xc2   :  { %s130_s28 = scalar_lea.hbm %s204_s2, 256 }
  0xc3   :  { %p131_p13 = scmp.ne.s32.totalorder %s204_s2, %s130_s28  ;;  %p134_p0 = scmp.lt.u32.totalorder %s130_s28, %s204_s2 }
  0xc5   :  { %p136_p1 = pnand %p134_p0, %p131_p13 }
  0xc7   :  { %139 = shalt.err (!%p136_p1)
}
  0xc8   :  { %81 = dma.vmem_to_hbm [thread:$0]  %s76_s25, 256, %s204_s2, [#allocation4], %s145_s19, %s145_s19, %s146_s20  }
  0xc9   :  { %142 = dma.done.wait [#allocation4], 256  }
  0xca   :  { %143 = vsyncadd [#allocation4], 4294967040 }
  0xcb   :  { %85 = vsyncpa [#allocation3], 1 }
  0xcc   :  { %86 = vsyncpa [#allocation4], 1 }

</bundles_post_ra>
